<compile_context>
chip_gen: v7x
topology: tpu7x:2x2x1
jax: 0.10.0
libtpu: 0.0.40
codegen_flags: <defaults>
</compile_context>

<pallas_src>
import functools

import jax
import jax.numpy as jnp
from jax.experimental import pallas as pl
from jax.experimental.pallas import tpu as pltpu

F_REAL = 10      # model feature width (Linear(10, 10))
F_PAD = 128      # lane-dense padded feature width
DEFAULT_TILE_B = 1024


def _round_up(n, m):
    return ((n + m - 1) // m) * m


def tiny_model_kernel(x_ref, w1t_ref, b1_ref, w2t_ref, b2_ref, o_ref, *, num_features):
    x = x_ref[...]                                            # (TILE_B, 128) f32

    # linear1 (weights pre-transposed in wrapper) + ReLU
    h = jnp.dot(x, w1t_ref[...], preferred_element_type=jnp.float32) + b1_ref[...]
    h = jnp.maximum(h, 0.0)                                   # padded lanes stay 0

    # linear2
    logits = jnp.dot(h, w2t_ref[...], preferred_element_type=jnp.float32) + b2_ref[...]

    # Mask padded feature lanes to -inf so they contribute exp(-inf)=0 to the softmax.
    col = jax.lax.broadcasted_iota(jnp.int32, logits.shape, 1)
    logits = jnp.where(col < num_features, logits, -jnp.inf)

    # Numerically-stable softmax over the last (lane) dim.
    m = jnp.max(logits, axis=-1, keepdims=True)
    e = jnp.exp(logits - m)
    denom = jnp.sum(e, axis=-1, keepdims=True)
    o_ref[...] = e * pl.reciprocal(denom, approx=False)       # exact recip on the EUP


def tiny_model_forward(x, w1, b1, w2, b2, tile_b=DEFAULT_TILE_B):
    """x: (B, 10); w1/w2: (out=10, in=10) PyTorch layout; b1/b2: (10,)."""
    B, F = x.shape
    assert F == F_REAL

    # Batch tiling: sublane-aligned tile, padded batch to a multiple of the tile.
    tile_b = max(8, min(_round_up(tile_b, 8), _round_up(B, 8)))
    Bp = _round_up(B, tile_b)
    grid = (Bp // tile_b,)

    # Lane-dense padding of inputs/weights (zeros in padded rows/cols keep the math exact).
    xp = jnp.zeros((Bp, F_PAD), jnp.float32).at[:B, :F].set(x.astype(jnp.float32))
    w1t = jnp.zeros((F_PAD, F_PAD), jnp.float32).at[:F, :F].set(w1.T.astype(jnp.float32))
    w2t = jnp.zeros((F_PAD, F_PAD), jnp.float32).at[:F, :F].set(w2.T.astype(jnp.float32))
    b1p = jnp.zeros((1, F_PAD), jnp.float32).at[:, :F].set(b1.astype(jnp.float32))
    b2p = jnp.zeros((1, F_PAD), jnp.float32).at[:, :F].set(b2.astype(jnp.float32))

    out_padded = pl.pallas_call(
        functools.partial(tiny_model_kernel, num_features=F),
        out_shape=jax.ShapeDtypeStruct((Bp, F_PAD), jnp.float32),
        grid_spec=pltpu.PrefetchScalarGridSpec(
            num_scalar_prefetch=0,
            grid=grid,
            in_specs=[
                pl.BlockSpec((tile_b, F_PAD), lambda i: (i, 0)),   # x: tiled over batch
                pl.BlockSpec((F_PAD, F_PAD), lambda i: (0, 0)),    # w1.T: resident
                pl.BlockSpec((1, F_PAD), lambda i: (0, 0)),        # b1: resident
                pl.BlockSpec((F_PAD, F_PAD), lambda i: (0, 0)),    # w2.T: resident
                pl.BlockSpec((1, F_PAD), lambda i: (0, 0)),        # b2: resident
            ],
            out_specs=pl.BlockSpec((tile_b, F_PAD), lambda i: (i, 0)),
        ),
        compiler_params=pltpu.CompilerParams(
            dimension_semantics=("parallel",),
        ),
    )(xp, w1t, b1p, w2t, b2p)

    return out_padded[:B, :F]


def init_params(key, in_features=F_REAL, out_features=F_REAL):
    # Mimic PyTorch default Linear init: U(-1/sqrt(in), 1/sqrt(in))
    k1, k2, k3, k4 = jax.random.split(key, 4)
    bound = 1.0 / jnp.sqrt(jnp.float32(in_features))
    w1 = jax.random.uniform(k1, (out_features, in_features), jnp.float32, -bound, bound)
    b1 = jax.random.uniform(k2, (out_features,), jnp.float32, -bound, bound)
    w2 = jax.random.uniform(k3, (out_features, in_features), jnp.float32, -bound, bound)
    b2 = jax.random.uniform(k4, (out_features,), jnp.float32, -bound, bound)
    return w1, b1, w2, b2


if __name__ == "__main__":
    key = jax.random.PRNGKey(0)
    k_x, k_p = jax.random.split(key)

    B, F = 8, F_REAL
    x = jax.random.normal(k_x, (B, F), jnp.float32)
    w1, b1, w2, b2 = init_params(k_p)

    out = tiny_model_forward(x, w1, b1, w2, b2)
    jax.block_until_ready(out)

    # Reference in plain JAX (same math as the PyTorch module; Softmax() -> dim=1 on 2-D).
    h = jnp.maximum(x @ w1.T + b1, 0.0)
    ref = jax.nn.softmax(h @ w2.T + b2, axis=-1)
    assert out.shape == (B, F)
    assert jnp.allclose(out, ref, atol=1e-5, rtol=1e-5)

    print("KERNEL_OK")
</pallas_src>

<mosaic_0001>
module attributes {stable_mosaic.version = 11 : i64} {
  func.func @tiny_model_kernel(%arg0: i32, %arg1: memref<8x128xf32, #tpu.memory_space<vmem>>, %arg2: memref<128x128xf32, #tpu.memory_space<vmem>>, %arg3: memref<1x128xf32, #tpu.memory_space<vmem>>, %arg4: memref<128x128xf32, #tpu.memory_space<vmem>>, %arg5: memref<1x128xf32, #tpu.memory_space<vmem>>, %arg6: memref<8x128xf32, #tpu.memory_space<vmem>>) attributes {dimension_semantics = [#tpu.dimension_semantics<parallel>], iteration_bounds = array<i64: 1>, scalar_prefetch = 0 : i64, scratch_operands = 0 : i64, tpu.core_type = #tpu.core_type<tc>, window_params = [{transform_indices = @transform_0, window_bounds = array<i64: 8, 128>}, {pipeline_mode = #tpu.pipeline_mode<synchronous>, transform_indices = @transform_1, window_bounds = array<i64: 128, 128>}, {pipeline_mode = #tpu.pipeline_mode<synchronous>, transform_indices = @transform_2, window_bounds = array<i64: 1, 128>}, {pipeline_mode = #tpu.pipeline_mode<synchronous>, transform_indices = @transform_3, window_bounds = array<i64: 128, 128>}, {pipeline_mode = #tpu.pipeline_mode<synchronous>, transform_indices = @transform_4, window_bounds = array<i64: 1, 128>}, {transform_indices = @transform_5, window_bounds = array<i64: 8, 128>}]} {
    %c0 = arith.constant 0 : index
    %c0_0 = arith.constant 0 : index
    %0 = vector.load %arg1[%c0, %c0_0] : memref<8x128xf32, #tpu.memory_space<vmem>>, vector<8x128xf32>
    %c0_1 = arith.constant 0 : index
    %c0_2 = arith.constant 0 : index
    %1 = vector.load %arg2[%c0_1, %c0_2] : memref<128x128xf32, #tpu.memory_space<vmem>>, vector<128x128xf32>
    %cst = arith.constant dense<0.000000e+00> : vector<8x128xf32>
    %2 = tpu.matmul %0, %1, %cst {dimension_numbers = #tpu.dot_dimension_numbers<[1], [0], [0], [1], [0, 0, 1, 1], [], []>} : vector<8x128xf32>, vector<128x128xf32>, vector<8x128xf32> -> vector<8x128xf32>
    %c0_3 = arith.constant 0 : index
    %c0_4 = arith.constant 0 : index
    %3 = vector.load %arg3[%c0_3, %c0_4] : memref<1x128xf32, #tpu.memory_space<vmem>>, vector<1x128xf32>
    %4 = vector.broadcast %3 : vector<1x128xf32> to vector<8x128xf32>
    %5 = arith.addf %2, %4 : vector<8x128xf32>
    %cst_5 = arith.constant 0.000000e+00 : f32
    %6 = vector.broadcast %cst_5 : f32 to vector<8x128xf32>
    %7 = arith.maximumf %5, %6 : vector<8x128xf32>
    %c0_6 = arith.constant 0 : index
    %c0_7 = arith.constant 0 : index
    %8 = vector.load %arg4[%c0_6, %c0_7] : memref<128x128xf32, #tpu.memory_space<vmem>>, vector<128x128xf32>
    %cst_8 = arith.constant dense<0.000000e+00> : vector<8x128xf32>
    %9 = tpu.matmul %7, %8, %cst_8 {dimension_numbers = #tpu.dot_dimension_numbers<[1], [0], [0], [1], [0, 0, 1, 1], [], []>} : vector<8x128xf32>, vector<128x128xf32>, vector<8x128xf32> -> vector<8x128xf32>
    %c0_9 = arith.constant 0 : index
    %c0_10 = arith.constant 0 : index
    %10 = vector.load %arg5[%c0_9, %c0_10] : memref<1x128xf32, #tpu.memory_space<vmem>>, vector<1x128xf32>
    %11 = vector.broadcast %10 : vector<1x128xf32> to vector<8x128xf32>
    %12 = arith.addf %9, %11 : vector<8x128xf32>
    %13 = tpu.iota {dimensions = array<i32: 1>} : vector<8x128xi32>
    %c10_i32 = arith.constant 10 : i32
    %14 = vector.broadcast %c10_i32 : i32 to vector<8x128xi32>
    %15 = arith.cmpi slt, %13, %14 : vector<8x128xi32>
    %cst_11 = arith.constant 0xFF800000 : f32
    %16 = vector.broadcast %cst_11 : f32 to vector<8x128xf32>
    %17 = arith.select %15, %12, %16 : vector<8x128xi1>, vector<8x128xf32>
    %cst_12 = arith.constant dense<0xFF800000> : vector<8xf32>
    %18 = vector.multi_reduction <maximumf>, %17, %cst_12 [1] : vector<8x128xf32> to vector<8xf32>
    %19 = vector.shape_cast %18 : vector<8xf32> to vector<8x1xf32>
    %20 = vector.broadcast %19 : vector<8x1xf32> to vector<8x128xf32>
    %21 = arith.subf %17, %20 : vector<8x128xf32>
    %22 = math.exp %21 : vector<8x128xf32>
    %cst_13 = arith.constant dense<0.000000e+00> : vector<8xf32>
    %23 = vector.multi_reduction <add>, %22, %cst_13 [1] : vector<8x128xf32> to vector<8xf32>
    %24 = vector.shape_cast %23 : vector<8xf32> to vector<8x1xf32>
    %25 = tpu.reciprocal %24 : vector<8x1xf32> -> vector<8x1xf32>
    %26 = vector.broadcast %25 : vector<8x1xf32> to vector<8x128xf32>
    %27 = arith.mulf %22, %26 : vector<8x128xf32>
    %c0_14 = arith.constant 0 : index
    %c0_15 = arith.constant 0 : index
    %28 = vector.load %arg6[%c0_14, %c0_15] : memref<8x128xf32, #tpu.memory_space<vmem>>, vector<8x128xf32>
    tpu.vector_store %arg6[%c0_14, %c0_15], %27 {strides = array<i32>} : memref<8x128xf32, #tpu.memory_space<vmem>>, vector<8x128xf32>,
    return
  }
  func.func @transform_0(%arg0: i32) -> (i32, i32) {
    %c0_i32 = arith.constant 0 : i32
    %c0_i32_0 = arith.constant 0 : i32
    return %arg0, %c0_i32 : i32, i32
  }
  func.func @transform_1(%arg0: i32) -> (i32, i32) {
    %c0_i32 = arith.constant 0 : i32
    %c0_i32_0 = arith.constant 0 : i32
    %c0_i32_1 = arith.constant 0 : i32
    return %c0_i32, %c0_i32_0 : i32, i32
  }
  func.func @transform_2(%arg0: i32) -> (i32, i32) {
    %c0_i32 = arith.constant 0 : i32
    %c0_i32_0 = arith.constant 0 : i32
    %c0_i32_1 = arith.constant 0 : i32
    return %c0_i32, %c0_i32_0 : i32, i32
  }
  func.func @transform_3(%arg0: i32) -> (i32, i32) {
    %c0_i32 = arith.constant 0 : i32
    %c0_i32_0 = arith.constant 0 : i32
    %c0_i32_1 = arith.constant 0 : i32
    return %c0_i32, %c0_i32_0 : i32, i32
  }
  func.func @transform_4(%arg0: i32) -> (i32, i32) {
    %c0_i32 = arith.constant 0 : i32
    %c0_i32_0 = arith.constant 0 : i32
    %c0_i32_1 = arith.constant 0 : i32
    return %c0_i32, %c0_i32_0 : i32, i32
  }
  func.func @transform_5(%arg0: i32) -> (i32, i32) {
    %c0_i32 = arith.constant 0 : i32
    %c0_i32_0 = arith.constant 0 : i32
    return %arg0, %c0_i32 : i32, i32
  }
}

</mosaic_0001>

<bundles_post_ra>
// kernel: tpu_custom_call.1
= control target key start
LH: loop header
LB: loop body
LE: loop exit
PB: predicated region body
PF: predicated region fallthrough
CT: control target
= control target key end

     0   :  { %10 = vsyncpa [#allocation3], 0  ;;  %s654_s0 = inlined_call_operand.hbm [shape: f32[8,128], index: 0, kind: input, shape index: {}]   ;;  %s655_s1 = inlined_call_operand.hbm [shape: f32[128,128], index: 1, kind: input, shape index: {}]   ;;  %s656_s2 = inlined_call_operand.vmem [shape: f32[1,128], index: 2, kind: input, shape index: {}]   ;;  %s657_s3 = inlined_call_operand.hbm [shape: f32[128,128], index: 3, kind: input, shape index: {}]   ;;  %s658_s4 = inlined_call_operand.vmem [shape: f32[1,128], index: 4, kind: input, shape index: {}]   ;;  %s659_s5 = inlined_call_operand.hbm [shape: f32[8,128], index: 5, kind: output, shape index: {}]  }
   0x1   :  { %11 = vsyncpa [#allocation6], 0 }
   0x2   :  { %12 = vsyncpa [#allocation4], 0  ;;  %s539_s18 = smov [#allocation5]   ;;  %s445_s22 = scalar_lea.hbm %s655_s1, 2048 }
   0x3   :  { %s28_s19 = sshll.u32 %s539_s18, 4  ;;  %p446_p0 = scmp.ne.s32.totalorder %s655_s1, %s445_s22  ;;  %s29_s19 = int_to_ptr.vmem [resolvable:$true] %s28_s19 }
   0x4   :  { %p449_p1 = scmp.lt.u32.totalorder %s445_s22, %s655_s1 }
   0x6   :  { %p451_p2 = pnand %p449_p1, %p446_p0 }
   0x8   :  { %454 = shalt.err (!%p451_p2)
}
   0x9   :  { %s455_s27 = scalar_lea.vmem %s29_s19, 2048  ;;  %p460_p4 = scmp.lt.s32.totalorder %s29_s19, %s29_s19 }
   0xa   :  { %p456_p3 = scmp.ne.s32.totalorder %s29_s19, %s455_s27  ;;  %p461_p5 = scmp.lt.s32.totalorder %s455_s27, %s455_s27 }
   0xc   :  { %p462_p6 = por %p461_p5, %p460_p4 }
   0xe   :  { %p463_p7 = pnand %p462_p6, %p456_p3 }
  0x10   :  { %466 = shalt.err (!%p463_p7)
}
  0x11   :  { %s540_s28 = smov 128   ;;  %s541_s29 = smov 8  }
  0x12   :  { %34 = dma.hbm_to_vmem [thread:$0]  %s655_s1, 2048, %s29_s19, [#allocation6], %s540_s28, %s540_s28, %s541_s29  }
  0x13   :  { %s542_s7 = smov [#allocation2]   ;;  %s543_s9 = smov [#allocation7]  }
  0x14   :  { %s19_s8 = sshll.u32 %s542_s7, 4  ;;  %s42_s10 = sshll.u32 %s543_s9, 4  ;;  %s20_s8 = int_to_ptr.vmem [resolvable:$true] %s19_s8  ;;  %s43_s10 = int_to_ptr.vmem [resolvable:$true] %s42_s10 }
  0x15   :  { %s467_s13 = scalar_lea.hbm %s654_s0, 128 }
  0x16   :  { %p468_p8 = scmp.ne.s32.totalorder %s654_s0, %s467_s13  ;;  %p471_p9 = scmp.lt.u32.totalorder %s467_s13, %s654_s0 }
  0x18   :  { %p473_p10 = pnand %p471_p9, %p468_p8 }
  0x1a   :  { %476 = shalt.err (!%p473_p10)
}
  0x1b   :  { %s477_s1 = scalar_lea.vmem %s20_s8, 128  ;;  %p482_p12 = scmp.lt.s32.totalorder %s20_s8, %s20_s8 }
  0x1c   :  { %p478_p11 = scmp.ne.s32.totalorder %s20_s8, %s477_s1  ;;  %p483_p13 = scmp.lt.s32.totalorder %s477_s1, %s477_s1 }
  0x1e   :  { %p484_p0 = por %p483_p13, %p482_p12 }
  0x20   :  { %p485_p1 = pnand %p484_p0, %p478_p11 }
  0x22   :  { %488 = shalt.err (!%p485_p1)
}
  0x23   :  { %22 = dma.hbm_to_vmem [thread:$0]  %s654_s0, 128, %s20_s8, [#allocation3]  }
  0x24   :  { %s489_s22 = scalar_lea.hbm %s657_s3, 2048 }
  0x25   :  { %p490_p2 = scmp.ne.s32.totalorder %s657_s3, %s489_s22  ;;  %p493_p3 = scmp.lt.u32.totalorder %s489_s22, %s657_s3 }
  0x27   :  { %p495_p4 = pnand %p493_p3, %p490_p2 }
  0x29   :  { %498 = shalt.err (!%p495_p4)
}
  0x2a   :  { %s499_s27 = scalar_lea.vmem %s43_s10, 2048  ;;  %p504_p6 = scmp.lt.s32.totalorder %s43_s10, %s43_s10 }
  0x2b   :  { %p500_p5 = scmp.ne.s32.totalorder %s43_s10, %s499_s27  ;;  %p505_p7 = scmp.lt.s32.totalorder %s499_s27, %s499_s27 }
  0x2d   :  { %p506_p8 = por %p505_p7, %p504_p6 }
  0x2f   :  { %p507_p9 = pnand %p506_p8, %p500_p5 }
  0x31   :  { %510 = shalt.err (!%p507_p9)
}
  0x32   :  { %48 = dma.hbm_to_vmem [thread:$0]  %s657_s3, 2048, %s43_s10, [#allocation6], %s540_s28, %s540_s28, %s541_s29  }
  0x33   :  { %533 = dma.done.wait [#allocation3], 128  }
  0x34   :  { %534 = vsyncadd [#allocation3], 4294967168 }
  0x35   :  { %535 = dma.done.wait [#allocation6], 4096  }
  0x36   :  { %536 = vsyncadd [#allocation6], 4294963200  ;;  %v544_v0 = vmov 0.0|0.0   ;;  %vm545_vm0 = vmmov 0   ;;  %v546_v1 = vmov 0.0   ;;  %v61_v2 = vld [vmem:[#allocation5] sm:$0xff]  ;;  %v248_v56 = vlaneseq }
  0x37   :  { %384 = vmatprep.subr.bf16.mxu0 %v544_v0  ;;  %346 = vmatprep.mubr.msk.f32.mxu0 %vm545_vm0, %v546_v1  ;;  %v62_v3 = vld [vmem:[#allocation5 + $0x8] sm:$0xff]  ;;  %v63_v4 = vld [vmem:[#allocation5 + $0x10] sm:$0xff]  ;;  %v64_v6 = vld [vmem:[#allocation5 + $0x18] sm:$0xff] }
  0x38   :  { %408 = vmatprep.subr.bf16.mxu1 %v544_v0  ;;  %381 = vmatprep.mubr.msk.f32.mxu1 %vm545_vm0, %v546_v1  ;;  %v385_v5 = vpack.c.bf16 %v62_v3, %v61_v2  ;;  %v388_v7 = vpack.c.bf16 %v64_v6, %v63_v4  ;;  %v65_v8 = vld [vmem:[#allocation5 + $0x20] sm:$0xff]  ;;  %v66_v9 = vld [vmem:[#allocation5 + $0x28] sm:$0xff]  ;;  %v157_v12 = vld [vmem:[#allocation7 + $0x10] sm:$0xff]  ;;  %v249_v57 = vand.u32 127, %v248_v56 }
  0x39   :  { %v155_v10 = vld [vmem:[#allocation7] sm:$0xff]  ;;  %v156_v11 = vld [vmem:[#allocation7 + $0x8] sm:$0xff]  ;;  %v158_v13 = vld [vmem:[#allocation7 + $0x18] sm:$0xff]  ;;  %v391_v14 = vpack.c.bf16 %v66_v9, %v65_v8 }
  0x3a   :  { %386 = vmatpush3.bf16.msra.mxu0 %v385_v5  ;;  %v409_v15 = vpack.c.bf16 %v156_v11, %v155_v10  ;;  %v67_v16 = vld [vmem:[#allocation5 + $0x30] sm:$0xff]  ;;  %v68_v17 = vld [vmem:[#allocation5 + $0x38] sm:$0xff]  ;;  %v412_v18 = vpack.c.bf16 %v158_v13, %v157_v12  ;;  %v159_v19 = vld [vmem:[#allocation7 + $0x20] sm:$0xff]  ;;  %vm250_vm1 = vcmp.lt.s32.totalorder %v249_v57, 10 }
  0x3b   :  { %387 = vmatprep.subr.bf16.mxu0 %v544_v0  ;;  %v160_v20 = vld [vmem:[#allocation7 + $0x28] sm:$0xff]  ;;  %v394_v21 = vpack.c.bf16 %v68_v17, %v67_v16  ;;  %v69_v22 = vld [vmem:[#allocation5 + $0x40] sm:$0xff]  ;;  %v161_v25 = vld [vmem:[#allocation7 + $0x30] sm:$0xff] }
  0x3c   :  { %410 = vmatpush3.bf16.msra.mxu1 %v409_v15  ;;  %v70_v23 = vld [vmem:[#allocation5 + $0x48] sm:$0xff]  ;;  %v415_v24 = vpack.c.bf16 %v160_v20, %v159_v19  ;;  %v162_v26 = vld [vmem:[#allocation7 + $0x38] sm:$0xff]  ;;  %v71_v28 = vld [vmem:[#allocation5 + $0x50] sm:$0xff] }
  0x3d   :  { %411 = vmatprep.subr.bf16.mxu1 %v544_v0  ;;  %v397_v27 = vpack.c.bf16 %v70_v23, %v69_v22  ;;  %v72_v29 = vld [vmem:[#allocation5 + $0x58] sm:$0xff]  ;;  %v418_v30 = vpack.c.bf16 %v162_v26, %v161_v25  ;;  %v163_v31 = vld [vmem:[#allocation7 + $0x40] sm:$0xff]  ;;  %v164_v32 = vld [vmem:[#allocation7 + $0x48] sm:$0xff] }
  0x3e   :  { %389 = vmatpush3.bf16.msra.mxu0 %v388_v7  ;;  %v400_v33 = vpack.c.bf16 %v72_v29, %v71_v28  ;;  %v73_v34 = vld [vmem:[#allocation5 + $0x60] sm:$0xff]  ;;  %v74_v35 = vld [vmem:[#allocation5 + $0x68] sm:$0xff]  ;;  %v421_v36 = vpack.c.bf16 %v164_v32, %v163_v31  ;;  %v165_v37 = vld [vmem:[#allocation7 + $0x50] sm:$0xff] }
  0x3f   :  { %390 = vmatprep.subr.bf16.mxu0 %v544_v0  ;;  %v166_v38 = vld [vmem:[#allocation7 + $0x58] sm:$0xff]  ;;  %v403_v39 = vpack.c.bf16 %v74_v35, %v73_v34  ;;  %v75_v40 = vld [vmem:[#allocation5 + $0x70] sm:$0xff]  ;;  %v167_v43 = vld [vmem:[#allocation7 + $0x60] sm:$0xff] }
  0x40   :  { %413 = vmatpush3.bf16.msra.mxu1 %v412_v18  ;;  %v76_v41 = vld [vmem:[#allocation5 + $0x78] sm:$0xff]  ;;  %v424_v42 = vpack.c.bf16 %v166_v38, %v165_v37  ;;  %v168_v44 = vld [vmem:[#allocation7 + $0x68] sm:$0xff]  ;;  %v169_v48 = vld [vmem:[#allocation7 + $0x70] sm:$0xff] }
  0x41   :  { %414 = vmatprep.subr.bf16.mxu1 %v544_v0  ;;  %v406_v45 = vpack.c.bf16 %v76_v41, %v75_v40  ;;  %v427_v46 = vpack.c.bf16 %v168_v44, %v167_v43  ;;  %v60_v47 = vld [vmem:[#allocation2] sm:$0xff] }
  0x42   :  { %392 = vmatpush3.bf16.msra.mxu0 %v391_v14  ;;  %v170_v49 = vld [vmem:[#allocation7 + $0x78] sm:$0xff] }
  0x43   :  { %393 = vmatprep.subr.bf16.mxu0 %v544_v0  ;;  %v430_v50 = vpack.c.bf16 %v170_v49, %v169_v48  ;;  %v278_v51 = vld [vmem:[%s656_s2] ss:$0 sm:$0xff]  ;;  %s547_s2 = smov [#allocation8]  }
  0x44   :  { %416 = vmatpush3.bf16.msra.mxu1 %v415_v24  ;;  %v279_v58 = vld [vmem:[%s658_s4] ss:$0 sm:$0xff]  ;;  %s268_s7 = sshll.u32 %s547_s2, 4  ;;  %s269_s7 = int_to_ptr.vmem [resolvable:$true] %s268_s7 }
  0x45   :  { %417 = vmatprep.subr.bf16.mxu1 %v544_v0  ;;  %s511_s4 = scalar_lea.vmem %s269_s7, 128  ;;  %p516_p11 = scmp.lt.s32.totalorder %s269_s7, %s269_s7 }
  0x46   :  { %395 = vmatpush3.bf16.msra.mxu0 %v394_v21  ;;  %p512_p10 = scmp.ne.s32.totalorder %s269_s7, %s511_s4  ;;  %p517_p12 = scmp.lt.s32.totalorder %s511_s4, %s511_s4 }
  0x47   :  { %396 = vmatprep.subr.bf16.mxu0 %v544_v0 }
  0x48   :  { %419 = vmatpush3.bf16.msra.mxu1 %v418_v30  ;;  %p518_p13 = por %p517_p12, %p516_p11 }
  0x49   :  { %420 = vmatprep.subr.bf16.mxu1 %v544_v0 }
  0x4a   :  { %398 = vmatpush3.bf16.msra.mxu0 %v397_v27  ;;  %p519_p0 = pnand %p518_p13, %p512_p10 }
  0x4b   :  { %399 = vmatprep.subr.bf16.mxu0 %v544_v0 }
  0x4c   :  { %422 = vmatpush3.bf16.msra.mxu1 %v421_v36 }
  0x4d   :  { %423 = vmatprep.subr.bf16.mxu1 %v544_v0 }
  0x4e   :  { %401 = vmatpush3.bf16.msra.mxu0 %v400_v33 }
  0x4f   :  { %402 = vmatprep.subr.bf16.mxu0 %v544_v0 }
  0x50   :  { %425 = vmatpush3.bf16.msra.mxu1 %v424_v42 }
  0x51   :  { %426 = vmatprep.subr.bf16.mxu1 %v544_v0 }
  0x52   :  { %404 = vmatpush3.bf16.msra.mxu0 %v403_v39 }
  0x53   :  { %405 = vmatprep.subr.bf16.mxu0 %v544_v0 }
  0x54   :  { %428 = vmatpush3.bf16.msra.mxu1 %v427_v46 }
  0x55   :  { %429 = vmatprep.subr.bf16.mxu1 %v544_v0 }
  0x56   :  { %407 = vmatpush3.bf16.msra.mxu0 %v406_v45 }
  0x58   :  { %431 = vmatpush3.bf16.msra.mxu1 %v430_v50 }
  0x59   :  { %347 = vmatmul.mubr.f32.vlgmr.msra.gmra.mrb[0].mxu0 %v60_v47 }
 0x12c   :  { %v150_v52 = vpop.f32.mrb[0].mxu0 }
 0x12d   :  { %v151_v53 = vadd.f32 %v278_v51, %v150_v52  ;;  %v348_v54 = vpop.f32.mrb[1].mxu0 }
 0x12f   :  { %v154_v55 = vmax.f32 %v151_v53, 0.0 }
 0x131   :  { %382 = vmatmul.mubr.f32.vlgmr.msra.gmra.mrb[0].mxu1 %v154_v55 }
 0x204   :  { %v244_v59 = vpop.f32.mrb[0].mxu1 }
 0x205   :  { %v245_v60 = vadd.f32 %v279_v58, %v244_v59  ;;  %v383_v61 = vpop.f32.mrb[1].mxu1 }
 0x207   :  { %v251_v62 = vsel %vm250_vm1, %v245_v60, -inf }
 0x208   :  { %252 = vmax.xlane.f32.xlu0 %v251_v62 }
 0x295   :  { %v253_v63 = vpop.xlane.xlu0 %252 }
 0x296   :  { %v254_v0 = vsub.f32 %v251_v62, %v253_v63 }
 0x298   :  { %v255_v1 = vmul.f32 1.442695, %v254_v0 }
 0x29a   :  { %441 = vpow2.f32 %v255_v1 }
 0x2a4   :  { %v442_v2 = vpop.eup %441 }
 0x2a5   :  { %257 = vadd.xlane.f32.xlu0 %v442_v2 }
 0x332   :  { %v258_v3 = vpop.xlane.xlu0 %257 }
 0x333   :  { %443 = vrcp.f32 %v258_v3 }
 0x33d   :  { %v444_v4 = vpop.eup %443 }
 0x33e   :  { %v260_v5 = vmul.f32 %v444_v4, %v442_v2 }
 0x340   :  { %261 = vst [vmem:[#allocation8] sm:$0xff] %v260_v5 }
 0x341   :  { %522 = shalt.err (!%p519_p0)
}
 0x342   :  { %s523_s10 = scalar_lea.hbm %s659_s5, 128 }
 0x343   :  { %p524_p1 = scmp.ne.s32.totalorder %s659_s5, %s523_s10  ;;  %p527_p2 = scmp.lt.u32.totalorder %s523_s10, %s659_s5 }
 0x345   :  { %p529_p3 = pnand %p527_p2, %p524_p1 }
 0x347   :  { %532 = shalt.err (!%p529_p3)
}
 0x348   :  { %271 = dma.vmem_to_hbm [thread:$0]  %s269_s7, 128, %s659_s5, [#allocation4]  }
 0x349   :  { %537 = dma.done.wait [#allocation4], 128  }
 0x34a   :  { %538 = vsyncadd [#allocation4], 4294967168 }
 0x34b   :  { %275 = vsyncpa [#allocation3], 1 }
 0x34c   :  { %276 = vsyncpa [#allocation6], 1 }
 0x34d   :  { %277 = vsyncpa [#allocation4], 1 }

</bundles_post_ra>
